<compile_context>
chip_gen: v6e
topology: v6e:2x2x1
jax: 0.10.0
libtpu: 0.0.40
codegen_flags: <defaults>
</compile_context>

<pallas_src>
import math
from functools import partial

import jax
import jax.numpy as jnp
from jax import lax
from jax.experimental import pallas as pl
from jax.experimental.pallas import tpu as pltpu


# ----------------------------------------------------------------------------
# Kernel
# ----------------------------------------------------------------------------
def temporal_sat_kernel(x_ref, w_ref, e_ref, *, o_dim, flat_out):
    # x_ref: (NB, T, D_in)   NB batch elements per grid step
    # w_ref: (D_in, 2*O)     fused [Wq*scale || Wk], already transposed (NN gemm)
    # e_ref: (NB, T, T)  or  (NB, T*T) when flat_out (lane-dense store path)
    nb, t, d_in = x_ref.shape

    # Flatten batch*time so the projection is ONE matmul over NB*T rows.
    # (block_b*T is kept a multiple of 8 at demo shapes -> cheap relabel.)
    x2d = x_ref[...].reshape(nb * t, d_in)

    # Single fused projection: (NB*T, D_in) @ (D_in, 2*O) on the MXU.
    proj = jnp.dot(x2d, w_ref[...], preferred_element_type=jnp.float32)

    # Split q (already scaled by 1/sqrt(D_in) via the wrapper) and k.
    q = proj[:, :o_dim].reshape(nb, t, o_dim)
    k = proj[:, o_dim:].reshape(nb, t, o_dim)

    # scores[b, i, j] = q[b, i, :] . k[b, j, :]  (batched NT matmul, no k.T)
    scores = jnp.einsum("bto,bso->bts", q, k,
                        preferred_element_type=jnp.float32)        # (NB, T, T)

    # Causal-style mask generated in-kernel (VPU work, hidden under MXU):
    # -1e9 added on the strictly-lower triangle (i > j), 0 elsewhere — exactly
    # the PyTorch module's `+ mask` semantics.
    row = lax.broadcasted_iota(jnp.int32, (t, t), 0)
    col = lax.broadcasted_iota(jnp.int32, (t, t), 1)
    mask = jnp.where(row > col, jnp.float32(-1e9), jnp.float32(0.0))

    e = scores + mask[None, :, :]

    if flat_out:
        e_ref[...] = e.reshape(nb, t * t).astype(e_ref.dtype)
    else:
        e_ref[...] = e.astype(e_ref.dtype)


# ----------------------------------------------------------------------------
# Chip / tiling heuristics
# ----------------------------------------------------------------------------
def _chip_info():
    """(vmem_capacity_bytes, num_tensorcores) — conservative fallbacks."""
    vmem_bytes = 64 << 20          # conservative default (v7x-sized)
    num_tc = 1
    try:
        kind = jax.devices()[0].device_kind.lower()
        if "v7" in kind or "tpu7" in kind:
            num_tc = 2
            vmem_bytes = 64 << 20
        elif "v5" in kind or "v6" in kind:
            vmem_bytes = 128 << 20
    except Exception:
        pass
    try:
        info = pltpu.get_tpu_info()
        vmem_bytes = int(getattr(info, "vmem_capacity_bytes", vmem_bytes))
    except Exception:
        pass
    return vmem_bytes, num_tc


def _block_footprint_bytes(block_b, T, D_in, O, in_itemsize=4, out_itemsize=4):
    """Per-grid-step VMEM footprint estimate (double-buffered I/O + f32 temps)."""
    x_tile = 2 * block_b * T * D_in * in_itemsize          # x block (double-buffered)
    w_tile = 2 * D_in * (2 * O) * in_itemsize              # fused weight (resident)
    out_tile = 2 * block_b * T * T * out_itemsize          # e block (double-buffered)
    interm = block_b * T * (2 * O) * 4 + block_b * T * T * 4   # proj + scores (f32)
    return x_tile + w_tile + out_tile + interm


def _choose_block_b(B, T, D_in, O, *, vmem_budget_bytes, min_steps,
                    in_itemsize=4, out_itemsize=4):
    """Largest divisor of B that (a) keeps >= min_steps grid steps (min_steps=2
    only on dual-TC chips so both cores get a 'parallel' step; 1 otherwise) and
    (b) whose tile footprint fits the per-chip VMEM budget."""
    min_steps = max(1, min(min_steps, B))
    best = 1
    for d in range(1, B + 1):
        if B % d != 0:
            continue
        if (B // d) < min_steps:
            continue
        if _block_footprint_bytes(d, T, D_in, O, in_itemsize, out_itemsize) \
                <= vmem_budget_bytes:
            best = max(best, d)
    return best


# ----------------------------------------------------------------------------
# Wrapper
# ----------------------------------------------------------------------------
def temporal_sat(x, wq, wk, *, block_b=None, compute_dtype=None,
                 out_dtype=jnp.float32):
    B, T, D_in = x.shape
    O = wq.shape[0]
    inv_sqrt_din = 1.0 / math.sqrt(D_in)

    # Fuse Wq||Wk, fold the 1/sqrt(D_in) scale into the Wq half, and
    # pre-transpose ONCE in the wrapper so the kernel runs an NN gemm.
    w_fused = jnp.concatenate([wq * inv_sqrt_din, wk], axis=0).T   # (D_in, 2*O)

    # Optional bf16 MXU operands (keep f32 accumulation inside the kernel).
    if compute_dtype is not None:
        x = x.astype(compute_dtype)
        w_fused = w_fused.astype(compute_dtype)

    in_itemsize = jnp.dtype(x.dtype).itemsize
    out_itemsize = jnp.dtype(out_dtype).itemsize

    vmem_bytes, num_tc = _chip_info()
    vmem_budget = int(0.6 * vmem_bytes)

    if block_b is None:
        block_b = _choose_block_b(B, T, D_in, O,
                                  vmem_budget_bytes=vmem_budget,
                                  min_steps=num_tc,
                                  in_itemsize=in_itemsize,
                                  out_itemsize=out_itemsize)
    assert B % block_b == 0, "batch must divide evenly into blocks"
    num_blocks = B // block_b

    # Lane-dense output path: only when the flattened (block_b, T*T) slab is
    # alignment-safe (T*T multiple of 128, sublane-aligned batch block) and the
    # natural (T, T) layout is not already lane-dense.
    flat_out = (T % 128 != 0) and ((T * T) % 128 == 0) and \
               (block_b % 8 == 0 or num_blocks == 1)

    footprint = _block_footprint_bytes(block_b, T, D_in, O,
                                       in_itemsize, out_itemsize)
    vmem_limit = int(min(0.75 * vmem_bytes,
                         max(32 << 20, footprint + (8 << 20))))

    kernel = partial(temporal_sat_kernel, o_dim=O, flat_out=flat_out)

    if flat_out:
        out_shape = jax.ShapeDtypeStruct((B, T * T), out_dtype)
        out_spec = pl.BlockSpec((block_b, T * T), lambda b: (b, 0))
    else:
        out_shape = jax.ShapeDtypeStruct((B, T, T), out_dtype)
        out_spec = pl.BlockSpec((block_b, T, T), lambda b: (b, 0, 0))

    e = pl.pallas_call(
        kernel,
        out_shape=out_shape,
        grid_spec=pltpu.PrefetchScalarGridSpec(
            num_scalar_prefetch=0,
            grid=(num_blocks,),
            in_specs=[
                pl.BlockSpec((block_b, T, D_in), lambda b: (b, 0, 0)),  # x block
                # Fused weight: constant index -> resident across steps.
                # (Single-buffering via pipeline_mode=pl.Buffered(1) is a
                #  further v7x VMEM saving if O*D_in grows.)
                pl.BlockSpec((D_in, 2 * O), lambda b: (0, 0)),
            ],
            out_specs=out_spec,
        ),
        compiler_params=pltpu.CompilerParams(
            dimension_semantics=("parallel",),
            vmem_limit_bytes=vmem_limit,
        ),
    )(x, w_fused)

    if flat_out:
        e = e.reshape(B, T, T)
    return e


# ----------------------------------------------------------------------------
# Reference + demo
# ----------------------------------------------------------------------------
def make_mask(n_timestamps):
    # tgt_mask = zeros; nopeak_mask = strictly-lower triangle; fill with -1e9
    i = jnp.arange(n_timestamps)[:, None]
    j = jnp.arange(n_timestamps)[None, :]
    return jnp.where(i > j, jnp.float32(-1e9), jnp.float32(0.0))


def reference(x, wq, wk):
    q = jnp.einsum("btd,od->bto", x, wq)
    k = jnp.einsum("btd,od->bto", x, wk)
    mask = make_mask(x.shape[1])
    return jnp.einsum("bto,bso->bts", q, k) / math.sqrt(x.shape[-1]) + mask


if __name__ == "__main__":
    # Small shapes consistent with the module: B nodes, T timestamps, in/out dims.
    B, T, IN_DIM, OUT_DIM, N_HEADS = 2, 8, 16, 32, 1

    key = jax.random.PRNGKey(0)
    kx, kq, kk = jax.random.split(key, 3)

    x = jax.random.normal(kx, (B, T, IN_DIM), dtype=jnp.float32)

    # Deterministic parameter init (nn.Linear default-style uniform bound).
    bound = 1.0 / math.sqrt(IN_DIM)
    wq = jax.random.uniform(kq, (OUT_DIM * N_HEADS, IN_DIM),
                            minval=-bound, maxval=bound, dtype=jnp.float32)
    wk = jax.random.uniform(kk, (OUT_DIM * N_HEADS, IN_DIM),
                            minval=-bound, maxval=bound, dtype=jnp.float32)
    # TODO(synk): w_v exists in the PyTorch module but is unused in forward.

    e = temporal_sat(x, wq, wk)
    jax.block_until_ready(e)

    e_ref = reference(x, wq, wk)
    assert e.shape == (B, T, T)
    assert jnp.allclose(e, e_ref, atol=1e-3, rtol=1e-3), "mismatch vs reference"

    print("KERNEL_OK")
</pallas_src>

<mosaic_0001>
module attributes {stable_mosaic.version = 11 : i64} {
  func.func @temporal_sat_kernel(%arg0: i32, %arg1: memref<2x8x16xf32, #tpu.memory_space<vmem>>, %arg2: memref<16x64xf32, #tpu.memory_space<vmem>>, %arg3: memref<2x8x8xf32, #tpu.memory_space<vmem>>) attributes {dimension_semantics = [#tpu.dimension_semantics<parallel>], iteration_bounds = array<i64: 1>, scalar_prefetch = 0 : i64, scratch_operands = 0 : i64, tpu.core_type = #tpu.core_type<tc>, window_params = [{transform_indices = @transform_0, window_bounds = array<i64: 2, 8, 16>}, {pipeline_mode = #tpu.pipeline_mode<synchronous>, transform_indices = @transform_1, window_bounds = array<i64: 16, 64>}, {transform_indices = @transform_2, window_bounds = array<i64: 2, 8, 8>}]} {
    %c0 = arith.constant 0 : index
    %c0_0 = arith.constant 0 : index
    %c0_1 = arith.constant 0 : index
    %0 = vector.load %arg1[%c0, %c0_0, %c0_1] : memref<2x8x16xf32, #tpu.memory_space<vmem>>, vector<2x8x16xf32>
    %1 = vector.shape_cast %0 : vector<2x8x16xf32> to vector<16x16xf32>
    %c0_2 = arith.constant 0 : index
    %c0_3 = arith.constant 0 : index
    %2 = vector.load %arg2[%c0_2, %c0_3] : memref<16x64xf32, #tpu.memory_space<vmem>>, vector<16x64xf32>
    %cst = arith.constant dense<0.000000e+00> : vector<16x64xf32>
    %3 = tpu.matmul %1, %2, %cst {dimension_numbers = #tpu.dot_dimension_numbers<[1], [0], [0], [1], [0, 0, 1, 1], [], []>} : vector<16x16xf32>, vector<16x64xf32>, vector<16x64xf32> -> vector<16x64xf32>
    %4 = vector.extract_strided_slice %3 {offsets = [0, 0], sizes = [16, 32], strides = [1, 1]} : vector<16x64xf32> to vector<16x32xf32>
    %5 = vector.shape_cast %4 : vector<16x32xf32> to vector<2x8x32xf32>
    %6 = vector.extract_strided_slice %3 {offsets = [0, 32], sizes = [16, 32], strides = [1, 1]} : vector<16x64xf32> to vector<16x32xf32>
    %7 = vector.shape_cast %6 : vector<16x32xf32> to vector<2x8x32xf32>
    "tpu.trace_start"() <{level = 10 : i32, message = "bto,bso->bts"}> : () -> ()
    %cst_4 = arith.constant dense<0.000000e+00> : vector<2x8x8xf32>
    %8 = tpu.matmul %5, %7, %cst_4 {dimension_numbers = #tpu.dot_dimension_numbers<[2], [2], [1], [1], [0, 0, 0, 1, 1, 1], [0], [0]>} : vector<2x8x32xf32>, vector<2x8x32xf32>, vector<2x8x8xf32> -> vector<2x8x8xf32>
    "tpu.trace_stop"() : () -> ()
    %9 = tpu.iota {dimensions = array<i32: 0>} : vector<8x8xi32>
    %10 = tpu.iota {dimensions = array<i32: 1>} : vector<8x8xi32>
    %11 = arith.cmpi sgt, %9, %10 : vector<8x8xi32>
    %cst_5 = arith.constant -1.000000e+09 : f32
    %cst_6 = arith.constant 0.000000e+00 : f32
    %12 = vector.broadcast %cst_5 : f32 to vector<8x8xf32>
    %13 = vector.broadcast %cst_6 : f32 to vector<8x8xf32>
    %14 = arith.select %11, %12, %13 : vector<8x8xi1>, vector<8x8xf32>
    %15 = vector.shape_cast %14 : vector<8x8xf32> to vector<1x8x8xf32>
    %16 = vector.broadcast %15 : vector<1x8x8xf32> to vector<2x8x8xf32>
    %17 = arith.addf %8, %16 : vector<2x8x8xf32>
    %c0_7 = arith.constant 0 : index
    %c0_8 = arith.constant 0 : index
    %c0_9 = arith.constant 0 : index
    %18 = vector.load %arg3[%c0_7, %c0_8, %c0_9] : memref<2x8x8xf32, #tpu.memory_space<vmem>>, vector<2x8x8xf32>
    tpu.vector_store %arg3[%c0_7, %c0_8, %c0_9], %17 {strides = array<i32>} : memref<2x8x8xf32, #tpu.memory_space<vmem>>, vector<2x8x8xf32>,
    return
  }
  func.func @transform_0(%arg0: i32) -> (i32, i32, i32) {
    %c0_i32 = arith.constant 0 : i32
    %c0_i32_0 = arith.constant 0 : i32
    %c0_i32_1 = arith.constant 0 : i32
    return %arg0, %c0_i32, %c0_i32_0 : i32, i32, i32
  }
  func.func @transform_1(%arg0: i32) -> (i32, i32) {
    %c0_i32 = arith.constant 0 : i32
    %c0_i32_0 = arith.constant 0 : i32
    %c0_i32_1 = arith.constant 0 : i32
    return %c0_i32, %c0_i32_0 : i32, i32
  }
  func.func @transform_2(%arg0: i32) -> (i32, i32, i32) {
    %c0_i32 = arith.constant 0 : i32
    %c0_i32_0 = arith.constant 0 : i32
    %c0_i32_1 = arith.constant 0 : i32
    return %arg0, %c0_i32, %c0_i32_0 : i32, i32, i32
  }
}

</mosaic_0001>

<bundles_post_ra>
// kernel: tpu_custom_call.1
= control target key start
LH: loop header
LB: loop body
LE: loop exit
PB: predicated region body
PF: predicated region fallthrough
CT: control target
= control target key end

     0   :  { %7 = vsyncpa [#allocation3], 0  ;;  %s454_s0 = inlined_call_operand.hbm [shape: f32[2,8,16], index: 0, kind: input, shape index: {}]   ;;  %s455_s1 = inlined_call_operand.hbm [shape: f32[16,64], index: 1, kind: input, shape index: {}]   ;;  %s456_s2 = inlined_call_operand.hbm [shape: f32[2,8,8], index: 2, kind: output, shape index: {}]  }
   0x1   :  { %8 = vsyncpa [#allocation6], 0 }
   0x2   :  { %9 = vsyncpa [#allocation4], 0  ;;  %s413_s9 = smov [#allocation2]  }
   0x3   :  { %s15_s10 = sshll.u32 %s413_s9, 4  ;;  %s16_s10 = int_to_ptr.vmem [resolvable:$true] %s15_s10 }
   0x4   :  { %s355_s11 = scalar_lea.vmem %s16_s10, 256  ;;  %p360_p1 = scmp.lt.s32.totalorder %s16_s10, %s16_s10 }
   0x5   :  { %p356_p0 = scmp.ne.s32.totalorder %s16_s10, %s355_s11  ;;  %p361_p2 = scmp.lt.s32.totalorder %s355_s11, %s355_s11 }
   0x7   :  { %p362_p3 = por %p361_p2, %p360_p1 }
   0x9   :  { %p363_p4 = pnand %p362_p3, %p356_p0 }
   0xb   :  { %366 = shalt.err (!%p363_p4)
}
   0xc   :  { %s414_s12 = smov 128   ;;  %s415_s13 = smov 8  }
   0xd   :  { %21 = dma.hbm_to_vmem [thread:$0]  %s454_s0, 256, %s16_s10, [#allocation3], %s414_s12, %s414_s12, %s415_s13  }
   0xe   :  { %s416_s16 = smov [#allocation5]  }
   0xf   :  { %s27_s17 = sshll.u32 %s416_s16, 4  ;;  %s28_s17 = int_to_ptr.vmem [resolvable:$true] %s27_s17 }
  0x10   :  { %s375_s18 = scalar_lea.vmem %s28_s17, 256  ;;  %p380_p6 = scmp.lt.s32.totalorder %s28_s17, %s28_s17 }
  0x11   :  { %p376_p5 = scmp.ne.s32.totalorder %s28_s17, %s375_s18  ;;  %p381_p7 = scmp.lt.s32.totalorder %s375_s18, %s375_s18 }
  0x13   :  { %p382_p8 = por %p381_p7, %p380_p6 }
  0x15   :  { %p383_p9 = pnand %p382_p8, %p376_p5 }
  0x17   :  { %386 = shalt.err (!%p383_p9)
}
  0x18   :  { %33 = dma.hbm_to_vmem [thread:$0]  %s455_s1, 256, %s28_s17, [#allocation6], %s414_s12, %s414_s12, %s415_s13  }
  0x19   :  { %407 = dma.done.wait [#allocation3], 256  }
  0x1a   :  { %408 = vsyncadd [#allocation3], 4294967040 }
  0x1b   :  { %409 = dma.done.wait [#allocation6], 256  }
  0x1c   :  { %410 = vsyncadd [#allocation6], 4294967040  ;;  %vm44_vm0 = vcmask 130048   ;;  %v43_v0 = vld [vmem:[#allocation5 + $0x8] sm:$0xff]  ;;  %v42_v1 = vld [vmem:[#allocation5] sm:$0xff]  ;;  %v417_v4 = vmov 0.0   ;;  %v126_v9 = vlaneseq }
  0x1d   :  { %v40_v2 = vld [vmem:[#allocation2] sm:$0xff]  ;;  %322 = vmatprep.subr.mxu0 %v43_v0  ;;  %v41_v3 = vld [vmem:[#allocation2 + $0x8] sm:$0xff]  ;;  %329 = vmatprep.subr.mxu1 %v417_v4  ;;  %vm418_vm1 = vmmov 0   ;;  %s419_s0 = smov 96   ;;  %vm135_vm2 = vcmask 261120   ;;  %vm287_vm4 = vcmask 64512  }
  0x1e   :  { %326 = vmatprep.mubr.msk.f32.mxu0 %vm44_vm0, %v40_v2  ;;  %323 = vmatpush3.msra.mxu0 %v43_v0  ;;  %v127_v10 = vshrl.u32 %v126_v9, 7  ;;  %v129_v11 = vand.u32 127, %v126_v9  ;;  %s420_s1 = smov [#allocation7]  }
  0x1f   :  { %324 = vmatprep.subr.mxu0 %v42_v1  ;;  %331 = vmatprep.mubr.msk.f32.mxu1 %vm418_vm1, %v417_v4  ;;  %s295_s21 = sshll.u32 %s420_s1, 4  ;;  %s296_s21 = int_to_ptr.vmem [resolvable:$true] %s295_s21 }
  0x20   :  { %325 = vmatpush3.msra.mxu0 %v42_v1  ;;  %vm130_vm3 = vcmp.gt.s32.totalorder %v127_v10, %v129_v11  ;;  %s387_s22 = scalar_lea.vmem %s296_s21, 256  ;;  %p392_p11 = scmp.lt.s32.totalorder %s296_s21, %s296_s21 }
  0x21   :  { %327 = vmatmul.mubr.msk.f32.vlgmr.msra.gmra.mxu0 %vm44_vm0, %v41_v3  ;;  %334 = vmatprep.subr.mxu0 %v417_v4  ;;  %v131_v12 = vsel %vm130_vm3, -1e+09, %v417_v4  ;;  %p388_p10 = scmp.ne.s32.totalorder %s296_s21, %s387_s22  ;;  %p393_p12 = scmp.lt.s32.totalorder %s387_s22, %s387_s22 }
  0x22   :  { %336 = vmatprep.mubr.msk.f32.mxu0 %vm418_vm1, %v417_v4 }
  0x23   :  { %p394_p13 = por %p393_p12, %p392_p11 }
  0x25   :  { %p395_p0 = pnand %p394_p13, %p388_p10 }
  0xe1   :  { %v328_v5 = vpop.f32.mrf.mxu0 }
  0xe3   :  { %v117_v6 = vpop.f32.mrf.mxu0 }
  0xe4   :  { %133 = vrot.lane.b32.xlu0 %v117_v6, %s419_s0 }
  0xe8   :  { %211 = vrot.lane.b32.xlu0 %v328_v5, %s419_s0 }
 0x156   :  { %v134_v7 = vpop.permute.xlu0 %133 }
 0x157   :  { %330 = vmatpush3.xpose.msk.msra.mxu1 %vm135_vm2, %v134_v7 }
 0x15a   :  { %332 = vmatmul.mubr.msk.f32.vlgmr.msra.gmra.mxu1 %vm135_vm2, %v117_v6  ;;  %v212_v8 = vpop.permute.xlu0 %211 }
 0x15b   :  { %335 = vmatpush3.xpose.msk.msra.mxu0 %vm135_vm2, %v212_v8 }
 0x15e   :  { %337 = vmatmul.mubr.msk.f32.vlgmr.msra.gmra.mxu0 %vm135_vm2, %v328_v5 }
 0x21a   :  { %v206_v13 = vpop.f32.mrf.mxu1 }
 0x21b   :  { %v207_v14 = vadd.f32 %v206_v13, %v131_v12 }
 0x21c   :  { %v333_v15 = vpop.f32.mrf.mxu1 }
 0x21d   :  { %288 = vst.msk [vmem:[#allocation7] sm:$0xff] %vm287_vm4, %v207_v14 }
 0x21e   :  { %v283_v16 = vpop.f32.mrf.mxu0 }
 0x21f   :  { %v284_v17 = vadd.f32 %v283_v16, %v131_v12 }
 0x220   :  { %v338_v18 = vpop.f32.mrf.mxu0 }
 0x221   :  { %289 = vst.msk [vmem:[#allocation7 + $0x8] sm:$0xff] %vm287_vm4, %v284_v17 }
 0x222   :  { %398 = shalt.err (!%p395_p0)
}
 0x223   :  { %301 = dma.vmem_to_hbm [thread:$0]  %s296_s21, 256, %s456_s2, [#allocation4], %s414_s12, %s414_s12, %s415_s13  }
 0x224   :  { %411 = dma.done.wait [#allocation4], 256  }
 0x225   :  { %412 = vsyncadd [#allocation4], 4294967040 }
 0x226   :  { %305 = vsyncpa [#allocation3], 1 }
 0x227   :  { %306 = vsyncpa [#allocation6], 1 }
 0x228   :  { %307 = vsyncpa [#allocation4], 1 }

</bundles_post_ra>
